<compile_context>
chip_gen: v7x
topology: tpu7x:2x2x1
jax: 0.10.0
libtpu: 0.0.40
codegen_flags: <defaults>
</compile_context>

<pallas_src>
import functools

import jax
import jax.numpy as jnp
from jax.experimental import pallas as pl
from jax.experimental.pallas import tpu as pltpu


def _round_up(x, m):
    return ((x + m - 1) // m) * m


def _sign_sqrt(x):
    # sign(x) * sqrt(|x| + 1e-4), sign via selects (VPU friendly).
    sgn = jnp.where(x > 0.0, 1.0, jnp.where(x < 0.0, -1.0, 0.0))
    return sgn * jnp.sqrt(jnp.abs(x) + 0.0001)


def _yolo_loss_kernel(label_ref, pred_ref, out_ref, acc_ref, *, C, B, inv_n):
    """Blocks: label (C+5, tile_S, 128); pred (C+5B, tile_S, 128);
    out (8, 128) per shard; acc (8, 128) persistent f32 scratch."""
    j = pl.program_id(1)

    @pl.when(j == 0)
    def _init():
        acc_ref[...] = jnp.zeros_like(acc_ref)

    # Per-feature slices straight from the refs: each is a full (tile_S, 128)
    # block (full sublane/lane occupancy), no value-slicing relayouts.
    def lab(i):
        return label_ref[i].astype(jnp.float32)

    def prd(i):
        return pred_ref[i].astype(jnp.float32)

    l_conf = lab(C)
    obj = l_conf > 0.5
    l_x, l_y, l_w, l_h = lab(C + 1), lab(C + 2), lab(C + 3), lab(C + 4)
    l_xmin = l_x - l_w * 0.5
    l_xmax = l_x + l_w * 0.5
    l_ymin = l_y - l_h * 0.5
    l_ymax = l_y + l_h * 0.5
    l_area = jnp.abs(l_w * l_h)
    lbl_c0 = lab(0)   # first *class* prob; the reference compares this (bug kept)

    best_iou = None
    t_conf = t_x = t_y = t_w = t_h = None
    noobj = jnp.zeros_like(l_conf)

    for b in range(B):                      # static, tiny unrolled loop over boxes
        o = C + 5 * b
        p_conf, p_x, p_y = prd(o), prd(o + 1), prd(o + 2)
        p_w, p_h = prd(o + 3), prd(o + 4)
        iw = jnp.maximum(jnp.minimum(l_xmax, p_x + p_w * 0.5)
                         - jnp.maximum(l_xmin, p_x - p_w * 0.5), 0.0)
        ih = jnp.maximum(jnp.minimum(l_ymax, p_y + p_h * 0.5)
                         - jnp.maximum(l_ymin, p_y - p_h * 0.5), 0.0)
        inter = iw * ih
        union = l_area + jnp.abs(p_w * p_h) - inter
        iou_b = inter / (union + 1e-6)      # exact divide: best-box parity with torch
        if b == 0:
            best_iou = iou_b
            t_conf, t_x, t_y, t_w, t_h = p_conf, p_x, p_y, p_w, p_h
        else:
            better = iou_b > best_iou       # strict ">": ties keep the earlier box
            t_conf = jnp.where(better, p_conf, t_conf)
            t_x = jnp.where(better, p_x, t_x)
            t_y = jnp.where(better, p_y, t_y)
            t_w = jnp.where(better, p_w, t_w)
            t_h = jnp.where(better, p_h, t_h)
            best_iou = jnp.maximum(best_iou, iou_b)
        # MSE(label[..., 0], pred_boxes[..., b, 0]) over ALL cells (as in torch code).
        d0 = lbl_c0 - p_conf
        noobj = noobj + d0 * d0

    zero = jnp.zeros_like(l_conf)
    loc = jnp.where(obj, (l_x - t_x) ** 2 + (l_y - t_y) ** 2, zero)
    siz = jnp.where(obj, (_sign_sqrt(l_w) - _sign_sqrt(t_w)) ** 2
                    + (_sign_sqrt(l_h) - _sign_sqrt(t_h)) ** 2, zero)
    exist = jnp.where(obj, (t_conf - l_conf) ** 2, zero)

    # Class-probability MSE: single reduce over the class axis (leading axis of
    # the block), each class is a full (tile_S, 128) tile -> plain VPU adds.
    d_cls = (label_ref[pl.ds(0, C)].astype(jnp.float32)
             - pred_ref[pl.ds(0, C)].astype(jnp.float32))      # (C, tile_S, 128)
    prob = jnp.where(obj, jnp.sum(d_cls * d_cls, axis=0), zero)

    # Coalesced per-step accumulation: one (5, 128) RMW of the persistent acc.
    partial = jnp.concatenate(
        [jnp.sum(loc, axis=0, keepdims=True),
         jnp.sum(siz, axis=0, keepdims=True),
         jnp.sum(exist, axis=0, keepdims=True),
         jnp.sum(noobj, axis=0, keepdims=True),
         jnp.sum(prob, axis=0, keepdims=True)], axis=0)        # (5, 128)
    acc_ref[0:5, :] = acc_ref[0:5, :] + partial

    @pl.when(j == pl.num_programs(1) - 1)
    def _finalize():
        totals = jnp.sum(acc_ref[...], axis=1, keepdims=True) * inv_n   # (8, 1)
        out_ref[...] = jnp.broadcast_to(totals, (8, 128))


def yolo_loss(label, pred, num_classes, boxes_per_cell, *,
              lanes=128, max_tile_cells=32768, num_shards=1):
    """label: (batch, cells, cells, C+5); pred: (batch, cells, cells, C+5*B)."""
    batch, ca, cb, f_l = label.shape
    f_p = pred.shape[-1]
    assert f_l == num_classes + 5
    assert f_p == num_classes + 5 * boxes_per_cell
    n = batch * ca * cb

    quantum = 8 * lanes                      # one (8, lanes) sublane x lane slab of cells
    num_shards = max(1, int(num_shards))
    per_shard = _round_up(pl.cdiv(n, num_shards), quantum)
    tile_cells = min(_round_up(max_tile_cells, quantum), per_shard)
    steps = pl.cdiv(per_shard, tile_cells)
    n_pad = num_shards * steps * tile_cells
    tile_s = tile_cells // lanes
    total_s = n_pad // lanes

    label2d = label.reshape(n, f_l)
    pred2d = pred.reshape(n, f_p)
    if n_pad != n:
        # Zero-padded cells contribute exactly 0 to every loss term.
        label2d = jnp.pad(label2d, ((0, n_pad - n), (0, 0)))
        pred2d = jnp.pad(pred2d, ((0, n_pad - n), (0, 0)))

    # One-time feature-major layout (fused with the pad by XLA); the trailing
    # reshape is free (contiguous split of the cell axis into sublane x lane).
    label_fm = label2d.T.reshape(f_l, total_s, lanes)
    pred_fm = pred2d.T.reshape(f_p, total_s, lanes)

    kernel = functools.partial(
        _yolo_loss_kernel, C=num_classes, B=boxes_per_cell, inv_n=1.0 / n)

    bytes_in = n_pad * (f_l + f_p) * label_fm.dtype.itemsize
    out = pl.pallas_call(
        kernel,
        out_shape=jax.ShapeDtypeStruct((num_shards * 8, 128), jnp.float32),
        grid=(num_shards, steps),
        in_specs=[
            pl.BlockSpec((f_l, tile_s, lanes), lambda i, j: (0, i * steps + j, 0)),
            pl.BlockSpec((f_p, tile_s, lanes), lambda i, j: (0, i * steps + j, 0)),
        ],
        out_specs=pl.BlockSpec((8, 128), lambda i, j: (i, 0)),
        scratch_shapes=[pltpu.VMEM((8, 128), jnp.float32)],
        compiler_params=pltpu.CompilerParams(
            dimension_semantics=("parallel", "arbitrary"),
            vmem_limit_bytes=32 * 1024 * 1024),
        cost_estimate=pl.CostEstimate(
            flops=int(n_pad * (35 * boxes_per_cell + 3 * num_classes + 30)),
            transcendentals=int(n_pad * (boxes_per_cell + 4)),
            bytes_accessed=int(bytes_in + num_shards * 8 * 128 * 4)),
    )(label_fm, pred_fm)

    partials = out.reshape(num_shards, 8, 128)[:, :, 0]   # (num_shards, 8)
    totals = jnp.sum(partials, axis=0)                    # already scaled by 1/n
    return (totals[0], totals[1], totals[2], totals[3], totals[4])


def _yolo_loss_ref(label, pred, C, B):
    """Pure-JAX reference mirroring the PyTorch module (for self-validation)."""
    batch, ca, cb, _ = label.shape
    n = batch * ca * cb
    lab = label.reshape(n, -1).astype(jnp.float32)
    prd = pred.reshape(n, -1).astype(jnp.float32)
    obj = (lab[:, C] > 0.5).astype(jnp.float32)
    lb = lab[:, C:C + 5]                            # (n, 5)
    pb = prd[:, C:].reshape(n, B, 5)                # (n, B, 5)

    l_min = lb[:, 1:3] - lb[:, 3:5] * 0.5
    l_max = lb[:, 1:3] + lb[:, 3:5] * 0.5
    p_min = pb[:, :, 1:3] - pb[:, :, 3:5] * 0.5
    p_max = pb[:, :, 1:3] + pb[:, :, 3:5] * 0.5
    inter_wh = jnp.maximum(jnp.minimum(l_max[:, None, :], p_max)
                           - jnp.maximum(l_min[:, None, :], p_min), 0.0)
    inter = inter_wh[..., 0] * inter_wh[..., 1]
    l_area = jnp.abs(lb[:, 3] * lb[:, 4])[:, None]
    p_area = jnp.abs(pb[:, :, 3] * pb[:, :, 4])
    iou_v = inter / (l_area + p_area - inter + 1e-6)
    idx = jnp.argmax(iou_v, axis=-1)                # first max on ties, like torch.max
    tb = jnp.take_along_axis(pb, idx[:, None, None], axis=1)[:, 0, :]

    def ss(x):
        return jnp.sign(x) * jnp.sqrt(jnp.abs(x) + 0.0001)

    m = 1.0 / n
    loc = jnp.sum(obj * jnp.sum((lb[:, 1:3] - tb[:, 1:3]) ** 2, axis=-1))
    siz = jnp.sum(obj * jnp.sum((ss(lb[:, 3:5]) - ss(tb[:, 3:5])) ** 2, axis=-1))
    exist = jnp.sum(obj * (tb[:, 0] - lb[:, 0]) ** 2)
    noobj = jnp.sum((lab[:, 0:1] - pb[:, :, 0]) ** 2)
    prob = jnp.sum(obj * jnp.sum((lab[:, :C] - prd[:, :C]) ** 2, axis=-1))
    return (m * loc, m * siz, m * exist, m * noobj, m * prob)


if __name__ == "__main__":
    num_classes = 3
    boxes_per_cell = 2

    key = jax.random.PRNGKey(0)
    k1, k2, k3, k4 = jax.random.split(key, 4)

    # Small config (docstring shapes): batch=2, cells=4 -> single (1,1) grid step.
    batch, cells = 2, 4
    label = jax.random.uniform(
        k1, (batch, cells, cells, num_classes + 5), dtype=jnp.float32)
    pred = jax.random.uniform(
        k2, (batch, cells, cells, num_classes + 5 * boxes_per_cell), dtype=jnp.float32)
    out = jax.block_until_ready(yolo_loss(label, pred, num_classes, boxes_per_cell))
    ref = _yolo_loss_ref(label, pred, num_classes, boxes_per_cell)
    for a, b in zip(out, ref):
        assert jnp.allclose(a, b, rtol=2e-3, atol=1e-5), (float(a), float(b))

    # Larger config exercising the multi-step grid and the 2-shard path.
    batch2, cells2 = 4, 32
    label2 = jax.random.uniform(
        k3, (batch2, cells2, cells2, num_classes + 5), dtype=jnp.float32)
    pred2 = jax.random.uniform(
        k4, (batch2, cells2, cells2, num_classes + 5 * boxes_per_cell), dtype=jnp.float32)
    out2 = jax.block_until_ready(
        yolo_loss(label2, pred2, num_classes, boxes_per_cell,
                  max_tile_cells=1024, num_shards=2))
    ref2 = _yolo_loss_ref(label2, pred2, num_classes, boxes_per_cell)
    for a, b in zip(out2, ref2):
        assert jnp.allclose(a, b, rtol=2e-3, atol=1e-5), (float(a), float(b))

    print("KERNEL_OK")
</pallas_src>

<mosaic_0001>
module attributes {stable_mosaic.version = 11 : i64} {
  func.func @_yolo_loss_kernel(%arg0: i32, %arg1: i32, %arg2: memref<8x8x128xf32, #tpu.memory_space<vmem>>, %arg3: memref<13x8x128xf32, #tpu.memory_space<vmem>>, %arg4: memref<8x128xf32, #tpu.memory_space<vmem>>, %arg5: memref<8x128xf32, #tpu.memory_space<vmem>>) attributes {dimension_semantics = [#tpu.dimension_semantics<parallel>, #tpu.dimension_semantics<arbitrary>], iteration_bounds = array<i64: 1, 1>, scalar_prefetch = 0 : i64, scratch_operands = 1 : i64, tpu.core_type = #tpu.core_type<tc>, window_params = [{transform_indices = @transform_0, window_bounds = array<i64: 8, 8, 128>}, {transform_indices = @transform_1, window_bounds = array<i64: 13, 8, 128>}, {transform_indices = @transform_2, window_bounds = array<i64: 8, 128>}]} {
    %c0_i32 = arith.constant 0 : i32
    %0 = arith.cmpi eq, %arg1, %c0_i32 : i32
    %1 = arith.extui %0 : i1 to i32
    %c0_i32_0 = arith.constant 0 : i32
    %2 = arith.cmpi ne, %1, %c0_i32_0 : i32
    scf.if %2 {
      %cst_100 = arith.constant 0.000000e+00 : f32
      %219 = vector.broadcast %cst_100 : f32 to vector<8x128xf32>
      %c0_101 = arith.constant 0 : index
      %c0_102 = arith.constant 0 : index
      %220 = vector.load %arg5[%c0_101, %c0_102] : memref<8x128xf32, #tpu.memory_space<vmem>>, vector<8x128xf32>
      tpu.vector_store %arg5[%c0_101, %c0_102], %219 {strides = array<i32>} : memref<8x128xf32, #tpu.memory_space<vmem>>, vector<8x128xf32>,
    } else {
    }
    %c3 = arith.constant 3 : index
    %c0 = arith.constant 0 : index
    %c0_1 = arith.constant 0 : index
    %3 = vector.load %arg2[%c3, %c0, %c0_1] : memref<8x8x128xf32, #tpu.memory_space<vmem>>, vector<1x8x128xf32>
    %4 = vector.shape_cast %3 : vector<1x8x128xf32> to vector<8x128xf32>
    %cst = arith.constant 5.000000e-01 : f32
    %5 = vector.broadcast %cst : f32 to vector<8x128xf32>
    %6 = arith.cmpf ogt, %4, %5 : vector<8x128xf32>
    %c4 = arith.constant 4 : index
    %c0_2 = arith.constant 0 : index
    %c0_3 = arith.constant 0 : index
    %7 = vector.load %arg2[%c4, %c0_2, %c0_3] : memref<8x8x128xf32, #tpu.memory_space<vmem>>, vector<1x8x128xf32>
    %8 = vector.shape_cast %7 : vector<1x8x128xf32> to vector<8x128xf32>
    %c5 = arith.constant 5 : index
    %c0_4 = arith.constant 0 : index
    %c0_5 = arith.constant 0 : index
    %9 = vector.load %arg2[%c5, %c0_4, %c0_5] : memref<8x8x128xf32, #tpu.memory_space<vmem>>, vector<1x8x128xf32>
    %10 = vector.shape_cast %9 : vector<1x8x128xf32> to vector<8x128xf32>
    %c6 = arith.constant 6 : index
    %c0_6 = arith.constant 0 : index
    %c0_7 = arith.constant 0 : index
    %11 = vector.load %arg2[%c6, %c0_6, %c0_7] : memref<8x8x128xf32, #tpu.memory_space<vmem>>, vector<1x8x128xf32>
    %12 = vector.shape_cast %11 : vector<1x8x128xf32> to vector<8x128xf32>
    %c7 = arith.constant 7 : index
    %c0_8 = arith.constant 0 : index
    %c0_9 = arith.constant 0 : index
    %13 = vector.load %arg2[%c7, %c0_8, %c0_9] : memref<8x8x128xf32, #tpu.memory_space<vmem>>, vector<1x8x128xf32>
    %14 = vector.shape_cast %13 : vector<1x8x128xf32> to vector<8x128xf32>
    %cst_10 = arith.constant 5.000000e-01 : f32
    %15 = vector.broadcast %cst_10 : f32 to vector<8x128xf32>
    %16 = arith.mulf %12, %15 : vector<8x128xf32>
    %17 = arith.subf %8, %16 : vector<8x128xf32>
    %cst_11 = arith.constant 5.000000e-01 : f32
    %18 = vector.broadcast %cst_11 : f32 to vector<8x128xf32>
    %19 = arith.mulf %12, %18 : vector<8x128xf32>
    %20 = arith.addf %8, %19 : vector<8x128xf32>
    %cst_12 = arith.constant 5.000000e-01 : f32
    %21 = vector.broadcast %cst_12 : f32 to vector<8x128xf32>
    %22 = arith.mulf %14, %21 : vector<8x128xf32>
    %23 = arith.subf %10, %22 : vector<8x128xf32>
    %cst_13 = arith.constant 5.000000e-01 : f32
    %24 = vector.broadcast %cst_13 : f32 to vector<8x128xf32>
    %25 = arith.mulf %14, %24 : vector<8x128xf32>
    %26 = arith.addf %10, %25 : vector<8x128xf32>
    %27 = arith.mulf %12, %14 : vector<8x128xf32>
    %28 = math.absf %27 : vector<8x128xf32>
    %c0_14 = arith.constant 0 : index
    %c0_15 = arith.constant 0 : index
    %c0_16 = arith.constant 0 : index
    %29 = vector.load %arg2[%c0_14, %c0_15, %c0_16] : memref<8x8x128xf32, #tpu.memory_space<vmem>>, vector<1x8x128xf32>
    %30 = vector.shape_cast %29 : vector<1x8x128xf32> to vector<8x128xf32>
    %cst_17 = arith.constant 0.000000e+00 : f32
    %31 = vector.broadcast %cst_17 : f32 to vector<8x128xf32>
    %c3_18 = arith.constant 3 : index
    %c0_19 = arith.constant 0 : index
    %c0_20 = arith.constant 0 : index
    %32 = vector.load %arg3[%c3_18, %c0_19, %c0_20] : memref<13x8x128xf32, #tpu.memory_space<vmem>>, vector<1x8x128xf32>
    %33 = vector.shape_cast %32 : vector<1x8x128xf32> to vector<8x128xf32>
    %c4_21 = arith.constant 4 : index
    %c0_22 = arith.constant 0 : index
    %c0_23 = arith.constant 0 : index
    %34 = vector.load %arg3[%c4_21, %c0_22, %c0_23] : memref<13x8x128xf32, #tpu.memory_space<vmem>>, vector<1x8x128xf32>
    %35 = vector.shape_cast %34 : vector<1x8x128xf32> to vector<8x128xf32>
    %c5_24 = arith.constant 5 : index
    %c0_25 = arith.constant 0 : index
    %c0_26 = arith.constant 0 : index
    %36 = vector.load %arg3[%c5_24, %c0_25, %c0_26] : memref<13x8x128xf32, #tpu.memory_space<vmem>>, vector<1x8x128xf32>
    %37 = vector.shape_cast %36 : vector<1x8x128xf32> to vector<8x128xf32>
    %c6_27 = arith.constant 6 : index
    %c0_28 = arith.constant 0 : index
    %c0_29 = arith.constant 0 : index
    %38 = vector.load %arg3[%c6_27, %c0_28, %c0_29] : memref<13x8x128xf32, #tpu.memory_space<vmem>>, vector<1x8x128xf32>
    %39 = vector.shape_cast %38 : vector<1x8x128xf32> to vector<8x128xf32>
    %c7_30 = arith.constant 7 : index
    %c0_31 = arith.constant 0 : index
    %c0_32 = arith.constant 0 : index
    %40 = vector.load %arg3[%c7_30, %c0_31, %c0_32] : memref<13x8x128xf32, #tpu.memory_space<vmem>>, vector<1x8x128xf32>
    %41 = vector.shape_cast %40 : vector<1x8x128xf32> to vector<8x128xf32>
    %cst_33 = arith.constant 5.000000e-01 : f32
    %42 = vector.broadcast %cst_33 : f32 to vector<8x128xf32>
    %43 = arith.mulf %39, %42 : vector<8x128xf32>
    %44 = arith.addf %35, %43 : vector<8x128xf32>
    %45 = arith.minimumf %20, %44 : vector<8x128xf32>
    %cst_34 = arith.constant 5.000000e-01 : f32
    %46 = vector.broadcast %cst_34 : f32 to vector<8x128xf32>
    %47 = arith.mulf %39, %46 : vector<8x128xf32>
    %48 = arith.subf %35, %47 : vector<8x128xf32>
    %49 = arith.maximumf %17, %48 : vector<8x128xf32>
    %50 = arith.subf %45, %49 : vector<8x128xf32>
    %cst_35 = arith.constant 0.000000e+00 : f32
    %51 = vector.broadcast %cst_35 : f32 to vector<8x128xf32>
    %52 = arith.maximumf %50, %51 : vector<8x128xf32>
    %cst_36 = arith.constant 5.000000e-01 : f32
    %53 = vector.broadcast %cst_36 : f32 to vector<8x128xf32>
    %54 = arith.mulf %41, %53 : vector<8x128xf32>
    %55 = arith.addf %37, %54 : vector<8x128xf32>
    %56 = arith.minimumf %26, %55 : vector<8x128xf32>
    %cst_37 = arith.constant 5.000000e-01 : f32
    %57 = vector.broadcast %cst_37 : f32 to vector<8x128xf32>
    %58 = arith.mulf %41, %57 : vector<8x128xf32>
    %59 = arith.subf %37, %58 : vector<8x128xf32>
    %60 = arith.maximumf %23, %59 : vector<8x128xf32>
    %61 = arith.subf %56, %60 : vector<8x128xf32>
    %cst_38 = arith.constant 0.000000e+00 : f32
    %62 = vector.broadcast %cst_38 : f32 to vector<8x128xf32>
    %63 = arith.maximumf %61, %62 : vector<8x128xf32>
    %64 = arith.mulf %52, %63 : vector<8x128xf32>
    %65 = arith.mulf %39, %41 : vector<8x128xf32>
    %66 = math.absf %65 : vector<8x128xf32>
    %67 = arith.addf %28, %66 : vector<8x128xf32>
    %68 = arith.subf %67, %64 : vector<8x128xf32>
    %cst_39 = arith.constant 9.99999997E-7 : f32
    %69 = vector.broadcast %cst_39 : f32 to vector<8x128xf32>
    %70 = arith.addf %68, %69 : vector<8x128xf32>
    %71 = arith.divf %64, %70 : vector<8x128xf32>
    %72 = arith.subf %30, %33 : vector<8x128xf32>
    %73 = arith.mulf %72, %72 : vector<8x128xf32>
    %74 = arith.addf %31, %73 : vector<8x128xf32>
    %c8 = arith.constant 8 : index
    %c0_40 = arith.constant 0 : index
    %c0_41 = arith.constant 0 : index
    %75 = vector.load %arg3[%c8, %c0_40, %c0_41] : memref<13x8x128xf32, #tpu.memory_space<vmem>>, vector<1x8x128xf32>
    %76 = vector.shape_cast %75 : vector<1x8x128xf32> to vector<8x128xf32>
    %c9 = arith.constant 9 : index
    %c0_42 = arith.constant 0 : index
    %c0_43 = arith.constant 0 : index
    %77 = vector.load %arg3[%c9, %c0_42, %c0_43] : memref<13x8x128xf32, #tpu.memory_space<vmem>>, vector<1x8x128xf32>
    %78 = vector.shape_cast %77 : vector<1x8x128xf32> to vector<8x128xf32>
    %c10 = arith.constant 10 : index
    %c0_44 = arith.constant 0 : index
    %c0_45 = arith.constant 0 : index
    %79 = vector.load %arg3[%c10, %c0_44, %c0_45] : memref<13x8x128xf32, #tpu.memory_space<vmem>>, vector<1x8x128xf32>
    %80 = vector.shape_cast %79 : vector<1x8x128xf32> to vector<8x128xf32>
    %c11 = arith.constant 11 : index
    %c0_46 = arith.constant 0 : index
    %c0_47 = arith.constant 0 : index
    %81 = vector.load %arg3[%c11, %c0_46, %c0_47] : memref<13x8x128xf32, #tpu.memory_space<vmem>>, vector<1x8x128xf32>
    %82 = vector.shape_cast %81 : vector<1x8x128xf32> to vector<8x128xf32>
    %c12 = arith.constant 12 : index
    %c0_48 = arith.constant 0 : index
    %c0_49 = arith.constant 0 : index
    %83 = vector.load %arg3[%c12, %c0_48, %c0_49] : memref<13x8x128xf32, #tpu.memory_space<vmem>>, vector<1x8x128xf32>
    %84 = vector.shape_cast %83 : vector<1x8x128xf32> to vector<8x128xf32>
    %cst_50 = arith.constant 5.000000e-01 : f32
    %85 = vector.broadcast %cst_50 : f32 to vector<8x128xf32>
    %86 = arith.mulf %82, %85 : vector<8x128xf32>
    %87 = arith.addf %78, %86 : vector<8x128xf32>
    %88 = arith.minimumf %20, %87 : vector<8x128xf32>
    %cst_51 = arith.constant 5.000000e-01 : f32
    %89 = vector.broadcast %cst_51 : f32 to vector<8x128xf32>
    %90 = arith.mulf %82, %89 : vector<8x128xf32>
    %91 = arith.subf %78, %90 : vector<8x128xf32>
    %92 = arith.maximumf %17, %91 : vector<8x128xf32>
    %93 = arith.subf %88, %92 : vector<8x128xf32>
    %cst_52 = arith.constant 0.000000e+00 : f32
    %94 = vector.broadcast %cst_52 : f32 to vector<8x128xf32>
    %95 = arith.maximumf %93, %94 : vector<8x128xf32>
    %cst_53 = arith.constant 5.000000e-01 : f32
    %96 = vector.broadcast %cst_53 : f32 to vector<8x128xf32>
    %97 = arith.mulf %84, %96 : vector<8x128xf32>
    %98 = arith.addf %80, %97 : vector<8x128xf32>
    %99 = arith.minimumf %26, %98 : vector<8x128xf32>
    %cst_54 = arith.constant 5.000000e-01 : f32
    %100 = vector.broadcast %cst_54 : f32 to vector<8x128xf32>
    %101 = arith.mulf %84, %100 : vector<8x128xf32>
    %102 = arith.subf %80, %101 : vector<8x128xf32>
    %103 = arith.maximumf %23, %102 : vector<8x128xf32>
    %104 = arith.subf %99, %103 : vector<8x128xf32>
    %cst_55 = arith.constant 0.000000e+00 : f32
    %105 = vector.broadcast %cst_55 : f32 to vector<8x128xf32>
    %106 = arith.maximumf %104, %105 : vector<8x128xf32>
    %107 = arith.mulf %95, %106 : vector<8x128xf32>
    %108 = arith.mulf %82, %84 : vector<8x128xf32>
    %109 = math.absf %108 : vector<8x128xf32>
    %110 = arith.addf %28, %109 : vector<8x128xf32>
    %111 = arith.subf %110, %107 : vector<8x128xf32>
    %cst_56 = arith.constant 9.99999997E-7 : f32
    %112 = vector.broadcast %cst_56 : f32 to vector<8x128xf32>
    %113 = arith.addf %111, %112 : vector<8x128xf32>
    %114 = arith.divf %107, %113 : vector<8x128xf32>
    %115 = arith.cmpf ogt, %114, %71 : vector<8x128xf32>
    %116 = arith.select %115, %76, %33 : vector<8x128xi1>, vector<8x128xf32>
    %117 = arith.select %115, %78, %35 : vector<8x128xi1>, vector<8x128xf32>
    %118 = arith.select %115, %80, %37 : vector<8x128xi1>, vector<8x128xf32>
    %119 = arith.select %115, %82, %39 : vector<8x128xi1>, vector<8x128xf32>
    %120 = arith.select %115, %84, %41 : vector<8x128xi1>, vector<8x128xf32>
    %121 = arith.subf %30, %76 : vector<8x128xf32>
    %122 = arith.mulf %121, %121 : vector<8x128xf32>
    %123 = arith.addf %74, %122 : vector<8x128xf32>
    %cst_57 = arith.constant 0.000000e+00 : f32
    %124 = vector.broadcast %cst_57 : f32 to vector<8x128xf32>
    %125 = arith.subf %8, %117 : vector<8x128xf32>
    %126 = arith.mulf %125, %125 : vector<8x128xf32>
    %127 = arith.subf %10, %118 : vector<8x128xf32>
    %128 = arith.mulf %127, %127 : vector<8x128xf32>
    %129 = arith.addf %126, %128 : vector<8x128xf32>
    %130 = arith.select %6, %129, %124 : vector<8x128xi1>, vector<8x128xf32>
    %cst_58 = arith.constant 0.000000e+00 : f32
    %131 = vector.broadcast %cst_58 : f32 to vector<8x128xf32>
    %132 = arith.cmpf ogt, %12, %131 : vector<8x128xf32>
    %cst_59 = arith.constant 0.000000e+00 : f32
    %133 = vector.broadcast %cst_59 : f32 to vector<8x128xf32>
    %134 = arith.cmpf olt, %12, %133 : vector<8x128xf32>
    %cst_60 = arith.constant -1.000000e+00 : f32
    %cst_61 = arith.constant 0.000000e+00 : f32
    %135 = vector.broadcast %cst_60 : f32 to vector<8x128xf32>
    %136 = vector.broadcast %cst_61 : f32 to vector<8x128xf32>
    %137 = arith.select %134, %135, %136 : vector<8x128xi1>, vector<8x128xf32>
    %cst_62 = arith.constant 1.000000e+00 : f32
    %138 = vector.broadcast %cst_62 : f32 to vector<8x128xf32>
    %139 = arith.select %132, %138, %137 : vector<8x128xi1>, vector<8x128xf32>
    %140 = math.absf %12 : vector<8x128xf32>
    %cst_63 = arith.constant 9.99999974E-5 : f32
    %141 = vector.broadcast %cst_63 : f32 to vector<8x128xf32>
    %142 = arith.addf %140, %141 : vector<8x128xf32>
    %143 = math.sqrt %142 : vector<8x128xf32>
    %144 = arith.mulf %139, %143 : vector<8x128xf32>
    %cst_64 = arith.constant 0.000000e+00 : f32
    %145 = vector.broadcast %cst_64 : f32 to vector<8x128xf32>
    %146 = arith.cmpf ogt, %119, %145 : vector<8x128xf32>
    %cst_65 = arith.constant 0.000000e+00 : f32
    %147 = vector.broadcast %cst_65 : f32 to vector<8x128xf32>
    %148 = arith.cmpf olt, %119, %147 : vector<8x128xf32>
    %cst_66 = arith.constant -1.000000e+00 : f32
    %cst_67 = arith.constant 0.000000e+00 : f32
    %149 = vector.broadcast %cst_66 : f32 to vector<8x128xf32>
    %150 = vector.broadcast %cst_67 : f32 to vector<8x128xf32>
    %151 = arith.select %148, %149, %150 : vector<8x128xi1>, vector<8x128xf32>
    %cst_68 = arith.constant 1.000000e+00 : f32
    %152 = vector.broadcast %cst_68 : f32 to vector<8x128xf32>
    %153 = arith.select %146, %152, %151 : vector<8x128xi1>, vector<8x128xf32>
    %154 = math.absf %119 : vector<8x128xf32>
    %cst_69 = arith.constant 9.99999974E-5 : f32
    %155 = vector.broadcast %cst_69 : f32 to vector<8x128xf32>
    %156 = arith.addf %154, %155 : vector<8x128xf32>
    %157 = math.sqrt %156 : vector<8x128xf32>
    %158 = arith.mulf %153, %157 : vector<8x128xf32>
    %159 = arith.subf %144, %158 : vector<8x128xf32>
    %160 = arith.mulf %159, %159 : vector<8x128xf32>
    %cst_70 = arith.constant 0.000000e+00 : f32
    %161 = vector.broadcast %cst_70 : f32 to vector<8x128xf32>
    %162 = arith.cmpf ogt, %14, %161 : vector<8x128xf32>
    %cst_71 = arith.constant 0.000000e+00 : f32
    %163 = vector.broadcast %cst_71 : f32 to vector<8x128xf32>
    %164 = arith.cmpf olt, %14, %163 : vector<8x128xf32>
    %cst_72 = arith.constant -1.000000e+00 : f32
    %cst_73 = arith.constant 0.000000e+00 : f32
    %165 = vector.broadcast %cst_72 : f32 to vector<8x128xf32>
    %166 = vector.broadcast %cst_73 : f32 to vector<8x128xf32>
    %167 = arith.select %164, %165, %166 : vector<8x128xi1>, vector<8x128xf32>
    %cst_74 = arith.constant 1.000000e+00 : f32
    %168 = vector.broadcast %cst_74 : f32 to vector<8x128xf32>
    %169 = arith.select %162, %168, %167 : vector<8x128xi1>, vector<8x128xf32>
    %170 = math.absf %14 : vector<8x128xf32>
    %cst_75 = arith.constant 9.99999974E-5 : f32
    %171 = vector.broadcast %cst_75 : f32 to vector<8x128xf32>
    %172 = arith.addf %170, %171 : vector<8x128xf32>
    %173 = math.sqrt %172 : vector<8x128xf32>
    %174 = arith.mulf %169, %173 : vector<8x128xf32>
    %cst_76 = arith.constant 0.000000e+00 : f32
    %175 = vector.broadcast %cst_76 : f32 to vector<8x128xf32>
    %176 = arith.cmpf ogt, %120, %175 : vector<8x128xf32>
    %cst_77 = arith.constant 0.000000e+00 : f32
    %177 = vector.broadcast %cst_77 : f32 to vector<8x128xf32>
    %178 = arith.cmpf olt, %120, %177 : vector<8x128xf32>
    %cst_78 = arith.constant -1.000000e+00 : f32
    %cst_79 = arith.constant 0.000000e+00 : f32
    %179 = vector.broadcast %cst_78 : f32 to vector<8x128xf32>
    %180 = vector.broadcast %cst_79 : f32 to vector<8x128xf32>
    %181 = arith.select %178, %179, %180 : vector<8x128xi1>, vector<8x128xf32>
    %cst_80 = arith.constant 1.000000e+00 : f32
    %182 = vector.broadcast %cst_80 : f32 to vector<8x128xf32>
    %183 = arith.select %176, %182, %181 : vector<8x128xi1>, vector<8x128xf32>
    %184 = math.absf %120 : vector<8x128xf32>
    %cst_81 = arith.constant 9.99999974E-5 : f32
    %185 = vector.broadcast %cst_81 : f32 to vector<8x128xf32>
    %186 = arith.addf %184, %185 : vector<8x128xf32>
    %187 = math.sqrt %186 : vector<8x128xf32>
    %188 = arith.mulf %183, %187 : vector<8x128xf32>
    %189 = arith.subf %174, %188 : vector<8x128xf32>
    %190 = arith.mulf %189, %189 : vector<8x128xf32>
    %191 = arith.addf %160, %190 : vector<8x128xf32>
    %192 = arith.select %6, %191, %124 : vector<8x128xi1>, vector<8x128xf32>
    %193 = arith.subf %116, %4 : vector<8x128xf32>
    %194 = arith.mulf %193, %193 : vector<8x128xf32>
    %195 = arith.select %6, %194, %124 : vector<8x128xi1>, vector<8x128xf32>
    %c0_82 = arith.constant 0 : index
    %c0_83 = arith.constant 0 : index
    %c0_84 = arith.constant 0 : index
    %196 = vector.load %arg2[%c0_82, %c0_83, %c0_84] : memref<8x8x128xf32, #tpu.memory_space<vmem>>, vector<3x8x128xf32>
    %c0_85 = arith.constant 0 : index
    %c0_86 = arith.constant 0 : index
    %c0_87 = arith.constant 0 : index
    %197 = vector.load %arg3[%c0_85, %c0_86, %c0_87] : memref<13x8x128xf32, #tpu.memory_space<vmem>>, vector<3x8x128xf32>
    %198 = arith.subf %196, %197 : vector<3x8x128xf32>
    %199 = arith.mulf %198, %198 : vector<3x8x128xf32>
    %cst_88 = arith.constant dense<0.000000e+00> : vector<8x128xf32>
    %200 = vector.multi_reduction <add>, %199, %cst_88 [0] : vector<3x8x128xf32> to vector<8x128xf32>
    %201 = arith.select %6, %200, %124 : vector<8x128xi1>, vector<8x128xf32>
    %cst_89 = arith.constant dense<0.000000e+00> : vector<128xf32>
    %202 = vector.multi_reduction <add>, %130, %cst_89 [0] : vector<8x128xf32> to vector<128xf32>
    %203 = vector.shape_cast %202 : vector<128xf32> to vector<1x128xf32>
    %cst_90 = arith.constant dense<0.000000e+00> : vector<128xf32>
    %204 = vector.multi_reduction <add>, %192, %cst_90 [0] : vector<8x128xf32> to vector<128xf32>
    %205 = vector.shape_cast %204 : vector<128xf32> to vector<1x128xf32>
    %cst_91 = arith.constant dense<0.000000e+00> : vector<128xf32>
    %206 = vector.multi_reduction <add>, %195, %cst_91 [0] : vector<8x128xf32> to vector<128xf32>
    %207 = vector.shape_cast %206 : vector<128xf32> to vector<1x128xf32>
    %cst_92 = arith.constant dense<0.000000e+00> : vector<128xf32>
    %208 = vector.multi_reduction <add>, %123, %cst_92 [0] : vector<8x128xf32> to vector<128xf32>
    %209 = vector.shape_cast %208 : vector<128xf32> to vector<1x128xf32>
    %cst_93 = arith.constant dense<0.000000e+00> : vector<128xf32>
    %210 = vector.multi_reduction <add>, %201, %cst_93 [0] : vector<8x128xf32> to vector<128xf32>
    %211 = vector.shape_cast %210 : vector<128xf32> to vector<1x128xf32>
    %212 = tpu.concatenate %203, %205, %207, %209, %211 in 0 : vector<1x128xf32>, vector<1x128xf32>, vector<1x128xf32>, vector<1x128xf32>, vector<1x128xf32> -> vector<5x128xf32>
    %c0_94 = arith.constant 0 : index
    %c0_95 = arith.constant 0 : index
    %213 = vector.load %arg5[%c0_94, %c0_95] : memref<8x128xf32, #tpu.memory_space<vmem>>, vector<5x128xf32>
    %214 = arith.addf %213, %212 : vector<5x128xf32>
    %c0_96 = arith.constant 0 : index
    %c0_97 = arith.constant 0 : index
    %215 = vector.load %arg5[%c0_96, %c0_97] : memref<8x128xf32, #tpu.memory_space<vmem>>, vector<5x128xf32>
    tpu.vector_store %arg5[%c0_96, %c0_97], %214 {strides = array<i32>} : memref<8x128xf32, #tpu.memory_space<vmem>>, vector<5x128xf32>,
    %c0_i32_98 = arith.constant 0 : i32
    %216 = arith.cmpi eq, %arg1, %c0_i32_98 : i32
    %217 = arith.extui %216 : i1 to i32
    %c0_i32_99 = arith.constant 0 : i32
    %218 = arith.cmpi ne, %217, %c0_i32_99 : i32
    scf.if %218 {
      %c0_100 = arith.constant 0 : index
      %c0_101 = arith.constant 0 : index
      %219 = vector.load %arg5[%c0_100, %c0_101] : memref<8x128xf32, #tpu.memory_space<vmem>>, vector<8x128xf32>
      %cst_102 = arith.constant dense<0.000000e+00> : vector<8xf32>
      %220 = vector.multi_reduction <add>, %219, %cst_102 [1] : vector<8x128xf32> to vector<8xf32>
      %221 = vector.shape_cast %220 : vector<8xf32> to vector<8x1xf32>
      %cst_103 = arith.constant 3.125000e-02 : f32
      %222 = vector.broadcast %cst_103 : f32 to vector<8x1xf32>
      %223 = arith.mulf %221, %222 : vector<8x1xf32>
      %224 = vector.shape_cast %223 : vector<8x1xf32> to vector<8x1xf32>
      %225 = vector.broadcast %224 : vector<8x1xf32> to vector<8x128xf32>
      %c0_104 = arith.constant 0 : index
      %c0_105 = arith.constant 0 : index
      %226 = vector.load %arg4[%c0_104, %c0_105] : memref<8x128xf32, #tpu.memory_space<vmem>>, vector<8x128xf32>
      tpu.vector_store %arg4[%c0_104, %c0_105], %225 {strides = array<i32>} : memref<8x128xf32, #tpu.memory_space<vmem>>, vector<8x128xf32>,
    } else {
    }
    return
  }
  func.func @transform_0(%arg0: i32, %arg1: i32) -> (i32, i32, i32) {
    %c1_i32 = arith.constant 1 : i32
    %0 = arith.muli %arg0, %c1_i32 : i32
    %1 = arith.addi %0, %arg1 : i32
    %c0_i32 = arith.constant 0 : i32
    %c0_i32_0 = arith.constant 0 : i32
    %c0_i32_1 = arith.constant 0 : i32
    return %c0_i32, %1, %c0_i32_0 : i32, i32, i32
  }
  func.func @transform_1(%arg0: i32, %arg1: i32) -> (i32, i32, i32) {
    %c1_i32 = arith.constant 1 : i32
    %0 = arith.muli %arg0, %c1_i32 : i32
    %1 = arith.addi %0, %arg1 : i32
    %c0_i32 = arith.constant 0 : i32
    %c0_i32_0 = arith.constant 0 : i32
    %c0_i32_1 = arith.constant 0 : i32
    return %c0_i32, %1, %c0_i32_0 : i32, i32, i32
  }
  func.func @transform_2(%arg0: i32, %arg1: i32) -> (i32, i32) {
    %c0_i32 = arith.constant 0 : i32
    %c0_i32_0 = arith.constant 0 : i32
    return %arg0, %c0_i32 : i32, i32
  }
}

</mosaic_0001>

<bundles_post_ra>
// kernel: tpu_custom_call.1
= control target key start
LH: loop header
LB: loop body
LE: loop exit
PB: predicated region body
PF: predicated region fallthrough
CT: control target
= control target key end

     0   :  { %7 = vsyncpa [#allocation4], 0  ;;  %s575_s0 = inlined_call_operand.hbm [shape: f32[8,8,128], index: 0, kind: input, shape index: {}]   ;;  %s576_s1 = inlined_call_operand.hbm [shape: f32[13,8,128], index: 1, kind: input, shape index: {}]   ;;  %s577_s2 = inlined_call_operand.hbm [shape: f32[8,128], index: 2, kind: output, shape index: {}]  }
   0x1   :  { %8 = vsyncpa [#allocation7], 0 }
   0x2   :  { %9 = vsyncpa [#allocation5], 0  ;;  %s389_s9 = smov [#allocation3]   ;;  %s317_s13 = scalar_lea.hbm %s575_s0, 1024 }
   0x3   :  { %s18_s10 = sshll.u32 %s389_s9, 4  ;;  %p318_p0 = scmp.ne.s32.totalorder %s575_s0, %s317_s13  ;;  %s19_s10 = int_to_ptr.vmem [resolvable:$true] %s18_s10 }
   0x4   :  { %p321_p1 = scmp.lt.u32.totalorder %s317_s13, %s575_s0 }
   0x6   :  { %p323_p2 = pnand %p321_p1, %p318_p0 }
   0x8   :  { %326 = shalt.err (!%p323_p2)
}
   0x9   :  { %s327_s18 = scalar_lea.vmem %s19_s10, 1024  ;;  %p332_p4 = scmp.lt.s32.totalorder %s19_s10, %s19_s10 }
   0xa   :  { %p328_p3 = scmp.ne.s32.totalorder %s19_s10, %s327_s18  ;;  %p333_p5 = scmp.lt.s32.totalorder %s327_s18, %s327_s18 }
   0xc   :  { %p334_p6 = por %p333_p5, %p332_p4 }
   0xe   :  { %p335_p7 = pnand %p334_p6, %p328_p3 }
  0x10   :  { %338 = shalt.err (!%p335_p7)
}
  0x11   :  { %s390_s19 = smov 128   ;;  %s391_s20 = smov 8  }
  0x12   :  { %24 = dma.hbm_to_vmem [thread:$0]  %s575_s0, 1024, %s19_s10, [#allocation4], %s390_s19, %s390_s19, %s391_s20  }
  0x13   :  { %s392_s23 = smov [#allocation6]   ;;  %s339_s27 = scalar_lea.hbm %s576_s1, 1664 }
  0x14   :  { %s33_s24 = sshll.u32 %s392_s23, 4  ;;  %p340_p8 = scmp.ne.s32.totalorder %s576_s1, %s339_s27  ;;  %s34_s24 = int_to_ptr.vmem [resolvable:$true] %s33_s24 }
  0x15   :  { %p343_p9 = scmp.lt.u32.totalorder %s339_s27, %s576_s1 }
  0x17   :  { %p345_p10 = pnand %p343_p9, %p340_p8 }
  0x19   :  { %348 = shalt.err (!%p345_p10)
}
  0x1a   :  { %s349_s4 = scalar_lea.vmem %s34_s24, 1664  ;;  %p354_p12 = scmp.lt.s32.totalorder %s34_s24, %s34_s24 }
  0x1b   :  { %p350_p11 = scmp.ne.s32.totalorder %s34_s24, %s349_s4  ;;  %p355_p13 = scmp.lt.s32.totalorder %s349_s4, %s349_s4 }
  0x1d   :  { %p356_p0 = por %p355_p13, %p354_p12 }
  0x1f   :  { %p357_p1 = pnand %p356_p0, %p350_p11 }
  0x21   :  { %360 = shalt.err (!%p357_p1)
}
  0x22   :  { %39 = dma.hbm_to_vmem [thread:$0]  %s576_s1, 1664, %s34_s24, [#allocation7], %s390_s19, %s390_s19, %s391_s20  }
  0x23   :  { %383 = dma.done.wait [#allocation4], 1024  }
  0x24   :  { %384 = vsyncadd [#allocation4], 4294966272 }
  0x25   :  { %385 = dma.done.wait [#allocation7], 1664  }
  0x26   :  { %386 = vsyncadd [#allocation7], 4294965632  ;;  %v393_v0 = vmov 0.0   ;;  %v435_v1 = vld [vmem:[#allocation3 + $0x20] sm:$0xff]  ;;  %v437_v2 = vld [vmem:[#allocation3 + $0x28] sm:$0xff]  ;;  %s394_s1 = smov [#allocation8]  }
  0x27   :  { %52 = vst [vmem:[#allocation2] sm:$0xff] %v393_v0  ;;  %v439_v3 = vld [vmem:[#allocation3 + $0x30] sm:$0xff]  ;;  %v441_v4 = vld [vmem:[#allocation3 + $0x38] sm:$0xff]  ;;  %v454_v13 = vld [vmem:[#allocation6 + $0x20] sm:$0xff]  ;;  %s289_s6 = sshll.u32 %s394_s1, 4  ;;  %s290_s6 = int_to_ptr.vmem [resolvable:$true] %s289_s6 }
  0x28   :  { %v64_v5 = vmul.f32 0.5, %v439_v3  ;;  %v67_v6 = vmul.f32 0.5, %v441_v4  ;;  %v70_v7 = vmul.f32 %v441_v4, %v439_v3  ;;  %v447_v8 = vld [vmem:[#allocation6 + $0x30] sm:$0xff]  ;;  %v449_v9 = vld [vmem:[#allocation6 + $0x38] sm:$0xff]  ;;  %v456_v14 = vld [vmem:[#allocation6 + $0x28] sm:$0xff]  ;;  %vm155_vm1 = vcmp.gt.f32.partialorder %v439_v3, 0.0  ;;  %p366_p3 = scmp.lt.s32.totalorder %s290_s6, %s290_s6 }
  0x29   :  { %v115_v15 = vld [vmem:[#allocation6 + $0x58] sm:$0xff]  ;;  %v83_v17 = vmul.f32 0.5, %v447_v8  ;;  %v90_v18 = vmul.f32 0.5, %v449_v9  ;;  %v98_v19 = vmul.f32 %v449_v9, %v447_v8  ;;  %v463_v20 = vld [vmem:[#allocation6 + $0x48] sm:$0xff]  ;;  %v465_v21 = vld [vmem:[#allocation6 + $0x50] sm:$0xff]  ;;  %vm156_vm2 = vcmp.lt.f32.partialorder %v439_v3, 0.0 }
  0x2a   :  { %v65_v10 = vsub.f32 %v435_v1, %v64_v5  ;;  %v66_v11 = vadd.f32 %v64_v5, %v435_v1  ;;  %v68_v12 = vsub.f32 %v437_v2, %v67_v6  ;;  %v69_v16 = vadd.f32 %v67_v6, %v437_v2  ;;  %v117_v22 = vld [vmem:[#allocation6 + $0x60] sm:$0xff]  ;;  %s361_s7 = scalar_lea.vmem %s290_s6, 128 }
  0x2b   :  { %v71_v23 = vand.u32 2147483647, %v70_v7  ;;  %v118_v24 = vmul.f32 0.5, %v115_v15  ;;  %v125_v25 = vmul.f32 0.5, %v117_v22  ;;  %v133_v26 = vmul.f32 %v117_v22, %v115_v15  ;;  %p362_p2 = scmp.ne.s32.totalorder %s290_s6, %s361_s7  ;;  %p367_p4 = scmp.lt.s32.totalorder %s361_s7, %s361_s7 }
  0x2c   :  { %v84_v27 = vadd.f32 %v83_v17, %v454_v13  ;;  %v86_v28 = vsub.f32 %v454_v13, %v83_v17  ;;  %v91_v29 = vadd.f32 %v90_v18, %v456_v14  ;;  %v93_v30 = vsub.f32 %v456_v14, %v90_v18  ;;  %v74_v17 = vld [vmem:[#allocation6 + $0x18] sm:$0xff] }
  0x2d   :  { %v99_v31 = vand.u32 2147483647, %v98_v19  ;;  %v119_v32 = vadd.f32 %v118_v24, %v463_v20  ;;  %v121_v33 = vsub.f32 %v463_v20, %v118_v24  ;;  %v126_v34 = vadd.f32 %v125_v25, %v465_v21  ;;  %v222_v24 = vld [vmem:[#allocation6] sm:$0xff]  ;;  %p368_p5 = por %p367_p4, %p366_p3 }
  0x2e   :  { %v85_v35 = vmin.f32 %v66_v11, %v84_v27  ;;  %v87_v36 = vmax.f32 %v65_v10, %v86_v28  ;;  %v92_v37 = vmin.f32 %v69_v16, %v91_v29  ;;  %v94_v38 = vmax.f32 %v68_v12, %v93_v30 }
  0x2f   :  { %v120_v39 = vmin.f32 %v66_v11, %v119_v32  ;;  %v122_v40 = vmax.f32 %v65_v10, %v121_v33  ;;  %v127_v43 = vmin.f32 %v69_v16, %v126_v34  ;;  %v128_v44 = vsub.f32 %v465_v21, %v125_v25  ;;  %v72_v16 = vld [vmem:[#allocation3] sm:$0xff]  ;;  %v223_v25 = vld [vmem:[#allocation6 + $0x8] sm:$0xff]  ;;  %v221_v33 = vld [vmem:[#allocation3 + $0x10] sm:$0xff]  ;;  %p369_p6 = pnand %p368_p5, %p362_p2 }
  0x30   :  { %v88_v41 = vsub.f32 %v85_v35, %v87_v36  ;;  %v95_v42 = vsub.f32 %v92_v37, %v94_v38  ;;  %v100_v45 = vadd.f32 %v99_v31, %v71_v23  ;;  %v134_v50 = vand.u32 2147483647, %v133_v26  ;;  %v109_v26 = vld [vmem:[#allocation6 + $0x40] sm:$0xff]  ;;  %v224_v34 = vld [vmem:[#allocation6 + $0x10] sm:$0xff]  ;;  %v510_v35 = vld [vmem:[#allocation3 + $0x18] sm:$0xff] }
  0x31   :  { %v123_v46 = vsub.f32 %v120_v39, %v122_v40  ;;  %v129_v49 = vmax.f32 %v68_v12, %v128_v44  ;;  %v159_v61 = vand.u32 2147483647, %v439_v3  ;;  %v189_v62 = vand.u32 2147483647, %v441_v4 }
  0x32   :  { %v89_v47 = vmax.f32 %v88_v41, 0.0  ;;  %v96_v48 = vmax.f32 %v95_v42, 0.0  ;;  %v135_v56 = vadd.f32 %v134_v50, %v71_v23  ;;  %v220_v23 = vld [vmem:[#allocation3 + $0x8] sm:$0xff]  ;;  %v105_v28 = vsub.f32 %v72_v16, %v74_v17 }
  0x33   :  { %v124_v52 = vmax.f32 %v123_v46, 0.0  ;;  %v130_v53 = vsub.f32 %v127_v43, %v129_v49  ;;  %v477_v63 = vadd.f32 0.0001, %v159_v61  ;;  %v479_v6 = vadd.f32 0.0001, %v189_v62 }
  0x34   :  { %v97_v51 = vmul.f32 %v96_v48, %v89_v47  ;;  %v225_v30 = vsub.f32 %v72_v16, %v222_v24  ;;  %v226_v31 = vsub.f32 %v220_v23, %v223_v25  ;;  %v146_v32 = vsub.f32 %v72_v16, %v109_v26 }
  0x35   :  { %v131_v55 = vmax.f32 %v130_v53, 0.0  ;;  %vm55_vm3 = vcmp.gt.f32.partialorder %v510_v35, 0.5  ;;  %vm163_vm4 = vcmp.eq.f32.partialorder %v477_v63, inf  ;;  %v157_v41 = vsel %vm156_vm2, -1.0, %v393_v0 }
  0x36   :  { %v101_v54 = vsub.f32 %v100_v45, %v97_v51  ;;  %v228_v39 = vmul.f32 %v225_v30, %v225_v30  ;;  %v147_v40 = vmul.f32 %v146_v32, %v146_v32  ;;  %v166_v42 = vand.u32 2147483648, %v477_v63 }
  0x37   :  { %v132_v58 = vmul.f32 %v131_v55, %v124_v52  ;;  %vm186_vm5 = vcmp.lt.f32.partialorder %v441_v4, 0.0  ;;  %vm165_vm6 = vcmp.eq.f32.partialorder %v477_v63, 0.0  ;;  %vm193_vm7 = vcmp.eq.f32.partialorder %v479_v6, inf }
  0x38   :  { %v102_v57 = vadd.f32 1e-06, %v101_v54  ;;  %v158_v48 = vsel %vm155_vm1, 1.0, %v157_v41  ;;  %vm185_vm9 = vcmp.gt.f32.partialorder %v441_v4, 0.0  ;;  %v187_v52 = vsel %vm186_vm5, -1.0, %v393_v0 }
  0x39   :  { %v136_v59 = vsub.f32 %v135_v56, %v132_v58  ;;  %v196_v53 = vand.u32 2147483648, %v479_v6  ;;  %vm195_vm10 = vcmp.eq.f32.partialorder %v479_v6, 0.0  ;;  %vm264_vm2 = vcmask 1040384  }
  0x3a   :  { %305 = vrcp.f32 %v102_v57  ;;  %vm270_vm5 = vcmask 1043456  }
  0x3b   :  { %v137_v60 = vadd.f32 1e-06, %v136_v59  ;;  %v188_v59 = vsel %vm185_vm9, 1.0, %v187_v52 }
  0x3d   :  { %307 = vrcp.f32 %v137_v60 }
  0x3e   :  { %309 = vrsqrt.f32 %v477_v63 }
  0x3f   :  { %311 = vrsqrt.f32 %v479_v6 }
  0x44   :  { %v306_v5 = vpop.eup %305 }
  0x45   :  { %v104_v7 = vmul.f32 %v306_v5, %v97_v51 }
  0x47   :  { %v308_v10 = vpop.eup %307 }
  0x48   :  { %v139_v11 = vmul.f32 %v308_v10, %v132_v58 }
  0x4a   :  { %vm483_vm0 = vcmp.gt.f32.partialorder %v139_v11, %v104_v7 }
  0x4b   :  { %v490_v18 = vsel %vm483_vm0, %v115_v15, %v447_v8  ;;  %v495_v19 = vsel %vm483_vm0, %v117_v22, %v449_v9  ;;  %v142_v29 = vsel %vm483_vm0, %v463_v20, %v454_v13  ;;  %v143_v8 = vsel %vm483_vm0, %v465_v21, %v456_v14  ;;  %v310_v15 = vpop.eup %309 }
  0x4c   :  { %v173_v27 = vand.u32 2147483647, %v490_v18  ;;  %v203_v22 = vand.u32 2147483647, %v495_v19  ;;  %v149_v13 = vsub.f32 %v435_v1, %v142_v29  ;;  %v151_v20 = vsub.f32 %v437_v2, %v143_v8  ;;  %v312_v14 = vpop.eup %311 }
  0x4d   :  { %v106_v21 = vmul.f32 %v105_v28, %v105_v28  ;;  %v162_v36 = vmul.f32 %v310_v15, %v477_v63  ;;  %v141_v38 = vsel %vm483_vm0, %v109_v26, %v74_v17  ;;  %v227_v1 = vsub.f32 %v221_v33, %v224_v34 }
  0x4e   :  { %v506_v9 = vadd.f32 0.0001, %v173_v27  ;;  %v519_v37 = vadd.f32 0.0001, %v203_v22  ;;  %v229_v2 = vmul.f32 %v226_v31, %v226_v31  ;;  %v150_v43 = vmul.f32 %v149_v13, %v149_v13 }
  0x4f   :  { %v152_v44 = vmul.f32 %v151_v20, %v151_v20  ;;  %v192_v45 = vmul.f32 %v312_v14, %v479_v6  ;;  %v164_v46 = vsel %vm163_vm4, %v477_v63, %v162_v36  ;;  %v217_v47 = vsub.f32 %v141_v38, %v510_v35 }
  0x50   :  { %313 = vrsqrt.f32 %v506_v9  ;;  %vm170_vm8 = vcmp.lt.f32.partialorder %v490_v18, 0.0  ;;  %v230_v49 = vmul.f32 %v227_v1, %v227_v1  ;;  %v231_v50 = vadd.f32 %v229_v2, %v228_v39 }
  0x51   :  { %315 = vrsqrt.f32 %v519_v37  ;;  %v148_v51 = vadd.f32 %v147_v40, %v106_v21  ;;  %v153_v54 = vadd.f32 %v152_v44, %v150_v43  ;;  %v167_v55 = vsel %vm165_vm6, %v166_v42, %v164_v46 }
  0x52   :  { %v194_v56 = vsel %vm193_vm7, %v479_v6, %v192_v45  ;;  %vm169_vm11 = vcmp.gt.f32.partialorder %v490_v18, 0.0  ;;  %v171_v3 = vsel %vm170_vm8, -1.0, %v393_v0  ;;  %vm200_vm12 = vcmp.lt.f32.partialorder %v495_v19, 0.0 }
  0x53   :  { %v218_v57 = vmul.f32 %v217_v47, %v217_v47  ;;  %vm177_vm13 = vcmp.eq.f32.partialorder %v506_v9, inf  ;;  %v180_v4 = vand.u32 2147483648, %v506_v9  ;;  %v232_v60 = vadd.f32 %v231_v50, %v230_v49 }
  0x54   :  { %v168_v61 = vmul.f32 %v167_v55, %v158_v48  ;;  %vm179_vm14 = vcmp.eq.f32.partialorder %v506_v9, 0.0  ;;  %v197_v63 = vsel %vm195_vm10, %v196_v53, %v194_v56  ;;  %v154_v5 = vsel %vm55_vm3, %v153_v54, 0.0  ;;  %v272_v56 = vld [vmem:[#allocation2] sm:$0x1f] }
  0x55   :  { %v172_v6 = vsel %vm169_vm11, 1.0, %v171_v3  ;;  %vm199_vm15 = vcmp.gt.f32.partialorder %v495_v19, 0.0  ;;  %v201_v7 = vsel %vm200_vm12, -1.0, %v393_v0  ;;  %vm207_vm0 = vcmp.eq.f32.partialorder %v519_v37, inf }
  0x56   :  { %v210_v12 = vand.u32 2147483648, %v519_v37  ;;  %v219_v16 = vsel %vm55_vm3, %v218_v57, 0.0  ;;  %vm209_vm1 = vcmp.eq.f32.partialorder %v519_v37, 0.0  ;;  %v202_v24 = vsel %vm199_vm15, 1.0, %v201_v7 }
  0x57   :  { %v233_v0 = vsel %vm55_vm3, %v232_v60, 0.0  ;;  %v234_v19 = vrot.slane %v154_v5, 4  ;;  %v198_v25 = vmul.f32 %v197_v63, %v188_v59  ;;  %v246_v27 = vrot.slane %v219_v16, 4 }
  0x58   :  { %v252_v8 = vrot.slane %v148_v51, 4  ;;  %vm268_vm4 = vcmask 1042432  }
  0x59   :  { %v235_v22 = vadd.f32 %v234_v19, %v154_v5  ;;  %v247_v32 = vadd.f32 %v246_v27, %v219_v16 }
  0x5a   :  { %v314_v58 = vpop.eup %313  ;;  %v253_v33 = vadd.f32 %v252_v8, %v148_v51 }
  0x5b   :  { %v176_v62 = vmul.f32 %v314_v58, %v506_v9  ;;  %v316_v10 = vpop.eup %315  ;;  %v236_v20 = vrot.slane %v235_v22, 2  ;;  %v248_v21 = vrot.slane %v247_v32, 2 }
  0x5c   :  { %v206_v18 = vmul.f32 %v316_v10, %v519_v37  ;;  %v254_v36 = vrot.slane %v253_v33, 2 }
  0x5d   :  { %v178_v11 = vsel %vm177_vm13, %v506_v9, %v176_v62  ;;  %v258_v9 = vrot.slane %v233_v0, 4  ;;  %v237_v1 = vadd.f32 %v236_v20, %v235_v22  ;;  %v249_v2 = vadd.f32 %v248_v21, %v247_v32 }
  0x5e   :  { %v181_v17 = vsel %vm179_vm14, %v180_v4, %v178_v11  ;;  %v208_v26 = vsel %vm207_vm0, %v519_v37, %v206_v18  ;;  %v255_v41 = vadd.f32 %v254_v36, %v253_v33 }
  0x5f   :  { %v182_v23 = vmul.f32 %v181_v17, %v172_v6  ;;  %v211_v29 = vsel %vm209_vm1, %v210_v12, %v208_v26  ;;  %v259_v13 = vadd.f32 %v258_v9, %v233_v0  ;;  %v238_v43 = vrot.slane %v237_v1, 1 }
  0x60   :  { %v212_v15 = vmul.f32 %v211_v29, %v202_v24  ;;  %v250_v45 = vrot.slane %v249_v2, 1  ;;  %v256_v47 = vrot.slane %v255_v41, 1 }
  0x61   :  { %v183_v28 = vsub.f32 %v168_v61, %v182_v23  ;;  %v260_v38 = vrot.slane %v259_v13, 2  ;;  %v239_v49 = vadd.f32 %v238_v43, %v237_v1 }
  0x62   :  { %v213_v31 = vsub.f32 %v198_v25, %v212_v15  ;;  %v251_v51 = vadd.f32 %v250_v45, %v249_v2  ;;  %v257_v35 = vadd.f32 %v256_v47, %v255_v41 }
  0x63   :  { %v184_v30 = vmul.f32 %v183_v28, %v183_v28  ;;  %v261_v42 = vadd.f32 %v260_v38, %v259_v13 }
  0x64   :  { %v214_v34 = vmul.f32 %v213_v31, %v213_v31 }
  0x65   :  { %v262_v48 = vrot.slane %v261_v42, 1 }
  0x66   :  { %v215_v14 = vadd.f32 %v214_v34, %v184_v30 }
  0x67   :  { %v263_v53 = vadd.f32 %v262_v48, %v261_v42 }
  0x68   :  { %v216_v37 = vsel %vm55_vm3, %v215_v14, 0.0  ;;  %vm266_vm3 = vcmask 1041408  }
  0x69   :  { %v240_v39 = vrot.slane %v216_v37, 4 }
  0x6b   :  { %v241_v40 = vadd.f32 %v240_v39, %v216_v37 }
  0x6d   :  { %v242_v44 = vrot.slane %v241_v40, 2 }
  0x6f   :  { %v243_v46 = vadd.f32 %v242_v44, %v241_v40 }
  0x71   :  { %v244_v50 = vrot.slane %v243_v46, 1 }
  0x73   :  { %v245_v52 = vadd.f32 %v244_v50, %v243_v46 }
  0x75   :  { %v265_v54 = vsel %vm264_vm2, %v239_v49, %v245_v52 }
  0x76   :  { %v267_v55 = vsel %vm266_vm3, %v265_v54, %v251_v51 }
  0x77   :  { %v269_v3 = vsel %vm268_vm4, %v267_v55, %v257_v35 }
  0x78   :  { %v271_v57 = vsel %vm270_vm5, %v269_v3, %v263_v53 }
  0x79   :  { %v273_v58 = vadd.f32 %v272_v56, %v271_v57 }
  0x7b   :  { %274 = vst [vmem:[#allocation2] sm:$0x1f] %v273_v58 }
  0x82   :  { %v278_v4 = vld [vmem:[#allocation2] sm:$0xff] }
  0x83   :  { %279 = vadd.xlane.f32.xlu0 %v278_v4 }
 0x110   :  { %v280_v59 = vpop.xlane.xlu0 %279 }
 0x111   :  { %v281_v60 = vmul.f32 0.03125, %v280_v59 }
 0x113   :  { %282 = vst [vmem:[#allocation8] sm:$0xff] %v281_v60 }
 0x114   :  { %372 = shalt.err (!%p369_p6)
}
 0x115   :  { %s373_s10 = scalar_lea.hbm %s577_s2, 128 }
 0x116   :  { %p374_p7 = scmp.ne.s32.totalorder %s577_s2, %s373_s10  ;;  %p377_p8 = scmp.lt.u32.totalorder %s373_s10, %s577_s2 }
 0x118   :  { %p379_p9 = pnand %p377_p8, %p374_p7 }
 0x11a   :  { %382 = shalt.err (!%p379_p9)
}
 0x11b   :  { %292 = dma.vmem_to_hbm [thread:$0]  %s290_s6, 128, %s577_s2, [#allocation5]  }
 0x11c   :  { %387 = dma.done.wait [#allocation5], 128  }
 0x11d   :  { %388 = vsyncadd [#allocation5], 4294967168 }
 0x11e   :  { %296 = vsyncpa [#allocation4], 1 }
 0x11f   :  { %297 = vsyncpa [#allocation7], 1 }
 0x120   :  { %298 = vsyncpa [#allocation5], 1 }

</bundles_post_ra>
